<compile_context>
chip_gen: v5e
topology: v5e:2x2
jax: 0.10.0
libtpu: 0.0.40
codegen_flags: <defaults>
</compile_context>

<pallas_src>
import functools

import jax
import jax.numpy as jnp
from jax.experimental import pallas as pl
from jax.experimental.pallas import tpu as pltpu

LANE = 128                 # vreg lane width (last dim of every tile)
ROW_ALIGN = 32             # keep second-minor block dims layout-friendly (f32/bf16/i8)
MIB = 1024 * 1024
_BCAST_BLOCK_BYTES_MAX = 4 * MIB   # cap for the single-channel-weight fast path


@functools.lru_cache(maxsize=None)
def _block_rows_max():
    """Rows per streaming tile: target ~2 MiB of f32 per input block.

    2 MiB blocks reach the >=85% HBM-roofline regime on v5e/v6e/v7x while the
    weighted path (3 inputs x 2 buffers) stays well inside every generation's
    physical VMEM once vmem_limit_bytes is raised explicitly.
    """
    vmem_bytes = 64 * MIB
    try:
        vmem_bytes = int(pltpu.get_tpu_info().vmem_capacity_bytes)
    except Exception:
        pass
    target_bytes = min(2 * MIB, vmem_bytes // 32)
    rows = (target_bytes // (LANE * 4)) // ROW_ALIGN * ROW_ALIGN
    return max(ROW_ALIGN, rows)


def _round_up(x, m):
    return ((x + m - 1) // m) * m


def _compiler_params(semantics, n_arrays, block_bytes):
    # Double-buffered DMA per array + margin for internal scratch / outputs.
    vmem = int(n_arrays * 2 * block_bytes + 4 * MIB)
    return pltpu.CompilerParams(dimension_semantics=semantics,
                                vmem_limit_bytes=vmem)


# ---------------------------------------------------------------------------
# Kernels: streaming reductions over a lane-dense (rows, 128) slab
# ---------------------------------------------------------------------------
def _mse_sum_kernel(p_ref, t_ref, out_ref, *, block_rows, bps, valid_rows,
                    needs_mask):
    """Accumulate sum((p - t)^2) into a resident (1,1,128) output block."""
    j = pl.program_id(1)

    @pl.when(j == 0)
    def _init():
        out_ref[...] = jnp.zeros_like(out_ref)

    d = p_ref[...].astype(jnp.float32) - t_ref[...].astype(jnp.float32)
    sq = d * d
    if needs_mask:
        start = (pl.program_id(0) * bps + j) * block_rows
        rid = start + jax.lax.broadcasted_iota(jnp.int32, sq.shape, 0)
        sq = jnp.where(rid < valid_rows, sq, 0.0)
    out_ref[...] += jnp.sum(sq, axis=0, keepdims=True)[None]


def _mse_sum_kernel_w(p_ref, t_ref, w_ref, out_ref, wsum_ref, *, block_rows,
                      bps, valid_rows, needs_mask):
    """Accumulate sum((p - t)^2 * w) and sum(w) in one streaming pass."""
    j = pl.program_id(1)

    @pl.when(j == 0)
    def _init():
        out_ref[...] = jnp.zeros_like(out_ref)
        wsum_ref[...] = jnp.zeros_like(wsum_ref)

    w = w_ref[...].astype(jnp.float32)
    d = p_ref[...].astype(jnp.float32) - t_ref[...].astype(jnp.float32)
    sq = d * d * w
    if needs_mask:
        start = (pl.program_id(0) * bps + j) * block_rows
        mask = (start + jax.lax.broadcasted_iota(jnp.int32, sq.shape, 0)
                ) < valid_rows
        sq = jnp.where(mask, sq, 0.0)
        w = jnp.where(mask, w, 0.0)
    out_ref[...] += jnp.sum(sq, axis=0, keepdims=True)[None]
    wsum_ref[...] += jnp.sum(w, axis=0, keepdims=True)[None]


def _mse_none_kernel(p_ref, t_ref, o_ref, *, loss_weight):
    d = p_ref[...].astype(jnp.float32) - t_ref[...].astype(jnp.float32)
    o_ref[...] = (loss_weight * d * d).astype(o_ref.dtype)


def _mse_none_kernel_w(p_ref, t_ref, w_ref, o_ref, *, loss_weight):
    d = p_ref[...].astype(jnp.float32) - t_ref[...].astype(jnp.float32)
    o_ref[...] = (loss_weight * d * d * w_ref[...].astype(jnp.float32)
                  ).astype(o_ref.dtype)


# ---------------------------------------------------------------------------
# Kernels: single-channel weight streamed as (N,1,S), broadcast over C in-kernel
# ---------------------------------------------------------------------------
def _mse_sum_kernel_bw(p_ref, t_ref, w_ref, out_ref):
    w = w_ref[...].astype(jnp.float32)                       # (1, 1, S)
    d = p_ref[...].astype(jnp.float32) - t_ref[...].astype(jnp.float32)  # (1,C,S)
    out_ref[...] = jnp.sum(d * d * w, axis=1, keepdims=True)  # (1, 1, S)


def _mse_none_kernel_bw(p_ref, t_ref, w_ref, o_ref, *, loss_weight):
    w = w_ref[...].astype(jnp.float32)                       # (1, 1, S)
    d = p_ref[...].astype(jnp.float32) - t_ref[...].astype(jnp.float32)
    o_ref[...] = (loss_weight * d * d * w).astype(o_ref.dtype)


# ---------------------------------------------------------------------------
# Wrappers
# ---------------------------------------------------------------------------
def _plan_slab(n):
    """Pick (slab_rows, block_rows) for n flat elements."""
    rows_data = pl.cdiv(n, LANE)
    bmax = _block_rows_max()
    if rows_data <= bmax:
        block_rows = _round_up(rows_data, ROW_ALIGN)
        rows_slab = block_rows          # one block == whole (small) slab
    else:
        block_rows = bmax               # big streaming tiles, no row padding
        rows_slab = rows_data
    return rows_slab, block_rows


def _to_slab(x, rows_slab):
    """Flatten to a lane-dense (rows_slab, 128) slab (pad only when required)."""
    flat = x.reshape(-1)
    pad = rows_slab * LANE - flat.shape[0]
    if pad:
        # TODO(synk): for large LANE-unaligned inputs this jnp.pad is one extra
        # HBM pass; LANE-aligned inputs (the common case) never hit it.
        flat = jnp.pad(flat, (0, pad))
    return flat.reshape(rows_slab, LANE)


def _pallas_mse_sum(p2d, t2d, w2d, block_rows):
    """Returns (sum(sq*w), sum(w)) if w2d is not None else (sum(sq), None)."""
    rows_slab = p2d.shape[0]
    num_blocks = pl.cdiv(rows_slab, block_rows)
    # 2-way shard across TensorCores (v7x megacore); robust to odd block counts.
    num_shards = 2 if num_blocks >= 2 else 1
    bps = pl.cdiv(num_blocks, num_shards)
    last_block = num_blocks - 1
    # Mask rows past the real slab (partial last block / shard-padding points).
    needs_mask = (num_shards * bps * block_rows) != rows_slab

    in_spec = pl.BlockSpec(
        (block_rows, LANE),
        lambda s, j: (jnp.minimum(s * bps + j, last_block), 0))
    out_spec = pl.BlockSpec((1, 1, LANE), lambda s, j: (s, 0, 0))
    block_bytes = block_rows * LANE * 4

    if w2d is None:
        kern = functools.partial(_mse_sum_kernel, block_rows=block_rows,
                                 bps=bps, valid_rows=rows_slab,
                                 needs_mask=needs_mask)
        out = pl.pallas_call(
            kern,
            out_shape=jax.ShapeDtypeStruct((num_shards, 1, LANE), jnp.float32),
            grid_spec=pltpu.PrefetchScalarGridSpec(
                num_scalar_prefetch=0,
                grid=(num_shards, bps),
                in_specs=[in_spec, in_spec],
                out_specs=out_spec),
            compiler_params=_compiler_params(("parallel", "arbitrary"), 2,
                                             block_bytes),
        )(p2d, t2d)
        return jnp.sum(out), None

    kern = functools.partial(_mse_sum_kernel_w, block_rows=block_rows, bps=bps,
                             valid_rows=rows_slab, needs_mask=needs_mask)
    out, wsum = pl.pallas_call(
        kern,
        out_shape=(jax.ShapeDtypeStruct((num_shards, 1, LANE), jnp.float32),
                   jax.ShapeDtypeStruct((num_shards, 1, LANE), jnp.float32)),
        grid_spec=pltpu.PrefetchScalarGridSpec(
            num_scalar_prefetch=0,
            grid=(num_shards, bps),
            in_specs=[in_spec, in_spec, in_spec],
            out_specs=[out_spec, out_spec]),
        compiler_params=_compiler_params(("parallel", "arbitrary"), 3,
                                         block_bytes),
    )(p2d, t2d, w2d)
    return jnp.sum(out), jnp.sum(wsum)


def _pallas_mse_none(p2d, t2d, w2d, block_rows, out_dtype, loss_weight):
    rows_slab = p2d.shape[0]
    grid = (pl.cdiv(rows_slab, block_rows),)
    spec = pl.BlockSpec((block_rows, LANE), lambda i: (i, 0))
    block_bytes = block_rows * LANE * 4
    if w2d is None:
        kernel = functools.partial(_mse_none_kernel, loss_weight=loss_weight)
        in_specs, args, n_arrays = [spec, spec], (p2d, t2d), 3
    else:
        kernel = functools.partial(_mse_none_kernel_w, loss_weight=loss_weight)
        in_specs, args, n_arrays = [spec, spec, spec], (p2d, t2d, w2d), 4
    return pl.pallas_call(
        kernel,
        out_shape=jax.ShapeDtypeStruct((rows_slab, LANE), out_dtype),
        grid_spec=pltpu.PrefetchScalarGridSpec(
            num_scalar_prefetch=0, grid=grid,
            in_specs=in_specs, out_specs=spec),
        compiler_params=_compiler_params(("parallel",), n_arrays, block_bytes),
    )(*args)


def _bcast_weight_ok(pred, weight):
    """Single-channel (N,1,spatial...) weight small enough for whole-row tiles."""
    if weight.ndim != pred.ndim or pred.ndim < 3:
        return False
    if weight.shape[0] != pred.shape[0] or weight.shape[1] != 1:
        return False
    if weight.shape[2:] != pred.shape[2:]:
        return False
    spatial = 1
    for s in pred.shape[2:]:
        spatial *= s
    return pred.shape[1] * spatial * 4 <= _BCAST_BLOCK_BYTES_MAX


def _pallas_mse_sum_bw(p3, t3, w3):
    n_b, c, s = p3.shape
    io_spec = pl.BlockSpec((1, c, s), lambda n: (n, 0, 0))
    w_spec = pl.BlockSpec((1, 1, s), lambda n: (n, 0, 0))
    out_spec = pl.BlockSpec((1, 1, s), lambda n: (n, 0, 0))
    block_bytes = c * s * 4
    out = pl.pallas_call(
        _mse_sum_kernel_bw,
        out_shape=jax.ShapeDtypeStruct((n_b, 1, s), jnp.float32),
        grid_spec=pltpu.PrefetchScalarGridSpec(
            num_scalar_prefetch=0, grid=(n_b,),
            in_specs=[io_spec, io_spec, w_spec],
            out_specs=out_spec),
        compiler_params=_compiler_params(("parallel",), 3, block_bytes),
    )(p3, t3, w3)
    return jnp.sum(out)


def _pallas_mse_none_bw(p3, t3, w3, out_dtype, loss_weight):
    n_b, c, s = p3.shape
    io_spec = pl.BlockSpec((1, c, s), lambda n: (n, 0, 0))
    w_spec = pl.BlockSpec((1, 1, s), lambda n: (n, 0, 0))
    kernel = functools.partial(_mse_none_kernel_bw, loss_weight=loss_weight)
    block_bytes = c * s * 4
    return pl.pallas_call(
        kernel,
        out_shape=jax.ShapeDtypeStruct((n_b, c, s), out_dtype),
        grid_spec=pltpu.PrefetchScalarGridSpec(
            num_scalar_prefetch=0, grid=(n_b,),
            in_specs=[io_spec, io_spec, w_spec],
            out_specs=io_spec),
        compiler_params=_compiler_params(("parallel",), 4, block_bytes),
    )(p3, t3, w3)


@functools.partial(jax.jit,
                   static_argnames=("loss_weight", "reduction", "has_weight"))
def _mse_loss_impl(pred, target, weight, loss_weight, reduction, has_weight):
    n = 1
    for s in pred.shape:
        n *= s
    c = pred.shape[1] if pred.ndim >= 2 else 1

    # ---- single-channel weight: stream as-is, broadcast over C in-kernel ----
    if has_weight and weight.shape != pred.shape and _bcast_weight_ok(pred, weight):
        n_b = pred.shape[0]
        spatial = n // (n_b * c)
        p3 = pred.reshape(n_b, c, spatial)
        t3 = target.reshape(n_b, c, spatial)
        w3 = weight.reshape(n_b, 1, spatial)
        if reduction == "none":
            out = _pallas_mse_none_bw(p3, t3, w3, pred.dtype, loss_weight)
            return out.reshape(pred.shape)
        total = _pallas_mse_sum_bw(p3, t3, w3)
        if reduction == "sum":
            return loss_weight * total
        # basicsr: single-channel weight -> denominator = sum(weight) * C
        denom = jnp.sum(weight, dtype=jnp.float32) * c
        return loss_weight * total / denom

    # ---- generic lane-dense slab path ----
    if has_weight and weight.shape != pred.shape:
        # TODO(synk): rare broadcastable weight shapes fall back to materializing.
        weight = jnp.broadcast_to(weight, pred.shape)

    rows_slab, block_rows = _plan_slab(n)
    p2d = _to_slab(pred, rows_slab)
    t2d = _to_slab(target, rows_slab)
    w2d = _to_slab(weight, rows_slab) if has_weight else None

    if reduction == "none":
        out2d = _pallas_mse_none(p2d, t2d, w2d, block_rows, pred.dtype,
                                 loss_weight)
        flat = out2d.reshape(-1)
        if flat.shape[0] != n:
            flat = flat[:n]
        return flat.reshape(pred.shape)

    total, wsum = _pallas_mse_sum(p2d, t2d, w2d, block_rows)
    if reduction == "sum":
        return loss_weight * total
    # reduction == "mean" (basicsr weighted_loss semantics)
    denom = wsum if has_weight else jnp.float32(n)
    return loss_weight * total / denom


class MSELoss:
    """Pallas-TPU version of basicsr MSELoss (forward only)."""

    def __init__(self, loss_weight=1.0, reduction="mean"):
        if reduction not in ("none", "mean", "sum"):
            raise ValueError(f"Unsupported reduction mode: {reduction}.")
        self.loss_weight = float(loss_weight)
        self.reduction = reduction

    def __call__(self, pred, target, weight=None, **kwargs):
        has_weight = weight is not None
        if not has_weight:
            weight = pred  # placeholder, ignored when has_weight=False
        return _mse_loss_impl(pred, target, weight, self.loss_weight,
                              self.reduction, has_weight)


# ---------------------------------------------------------------------------
# Demo / self-check
# ---------------------------------------------------------------------------
if __name__ == "__main__":
    key = jax.random.PRNGKey(0)
    k1, k2, k3, k4 = jax.random.split(key, 4)

    N, C, H, W = 2, 4, 16, 16
    pred = jax.random.normal(k1, (N, C, H, W), dtype=jnp.float32)
    target = jax.random.normal(k2, (N, C, H, W), dtype=jnp.float32)
    weight = jax.random.uniform(k3, (N, C, H, W), dtype=jnp.float32)
    sq = (pred - target) ** 2

    ok = True

    # reduction='mean', no weight
    loss_mean = MSELoss(1.0, "mean")(pred, target)
    jax.block_until_ready(loss_mean)
    ok &= bool(jnp.allclose(loss_mean, jnp.mean(sq), rtol=1e-5, atol=1e-5))

    # reduction='sum', full weight + loss_weight
    loss_sum = MSELoss(0.5, "sum")(pred, target, weight)
    jax.block_until_ready(loss_sum)
    ok &= bool(jnp.allclose(loss_sum, 0.5 * jnp.sum(sq * weight),
                            rtol=1e-5, atol=1e-4))

    # reduction='mean', full weight (denominator = sum(weight))
    loss_wmean = MSELoss(1.0, "mean")(pred, target, weight)
    ok &= bool(jnp.allclose(loss_wmean, jnp.sum(sq * weight) / jnp.sum(weight),
                            rtol=1e-5, atol=1e-5))

    # reduction='mean', single-channel weight (in-kernel broadcast path)
    w1 = jax.random.uniform(k4, (N, 1, H, W), dtype=jnp.float32)
    loss_w1 = MSELoss(1.0, "mean")(pred, target, w1)
    ref_w1 = jnp.sum(sq * w1) / (jnp.sum(w1) * C)
    ok &= bool(jnp.allclose(loss_w1, ref_w1, rtol=1e-5, atol=1e-5))

    # reduction='none', no weight
    loss_none = MSELoss(2.0, "none")(pred, target)
    ok &= bool(jnp.allclose(loss_none, 2.0 * sq, rtol=1e-5, atol=1e-5))
    ok &= loss_none.shape == pred.shape

    # reduction='none', single-channel weight
    loss_none_w1 = MSELoss(1.5, "none")(pred, target, w1)
    ok &= bool(jnp.allclose(loss_none_w1, 1.5 * sq * w1, rtol=1e-5, atol=1e-5))

    # non-128-aligned shape (exercises the small pad path)
    pr2 = jax.random.normal(k1, (2, 3, 15, 17), dtype=jnp.float32)
    tg2 = jax.random.normal(k2, (2, 3, 15, 17), dtype=jnp.float32)
    loss2 = MSELoss(1.0, "mean")(pr2, tg2)
    ok &= bool(jnp.allclose(loss2, jnp.mean((pr2 - tg2) ** 2),
                            rtol=1e-5, atol=1e-5))

    # large aligned input: multi-block, 2-way shard, masked partial last block
    pr3 = jax.random.normal(k3, (3, 4, 250, 512), dtype=jnp.float32)
    tg3 = jax.random.normal(k4, (3, 4, 250, 512), dtype=jnp.float32)
    wt3 = jax.random.uniform(k1, (3, 4, 250, 512), dtype=jnp.float32)
    loss3 = MSELoss(1.0, "mean")(pr3, tg3)
    ok &= bool(jnp.allclose(loss3, jnp.mean((pr3 - tg3) ** 2),
                            rtol=1e-4, atol=1e-4))
    loss3w = MSELoss(1.0, "sum")(pr3, tg3, wt3)
    ref3w = jnp.sum(((pr3 - tg3) ** 2) * wt3)
    ok &= bool(jnp.allclose(loss3w, ref3w, rtol=1e-4, atol=1e-2))

    jax.block_until_ready(loss3w)
    if ok:
        print("KERNEL_OK")
    else:
        print("KERNEL_MISMATCH")
</pallas_src>

<mosaic_0001>
module attributes {stable_mosaic.version = 11 : i64} {
  func.func @_mse_sum_kernel(%arg0: i32, %arg1: i32, %arg2: memref<32x128xf32, #tpu.memory_space<vmem>>, %arg3: memref<32x128xf32, #tpu.memory_space<vmem>>, %arg4: memref<1x1x128xf32, #tpu.memory_space<vmem>>) attributes {dimension_semantics = [#tpu.dimension_semantics<parallel>, #tpu.dimension_semantics<arbitrary>], iteration_bounds = array<i64: 1, 1>, scalar_prefetch = 0 : i64, scratch_operands = 0 : i64, tpu.core_type = #tpu.core_type<tc>, window_params = [{transform_indices = @transform_0, window_bounds = array<i64: 32, 128>}, {transform_indices = @transform_1, window_bounds = array<i64: 32, 128>}, {transform_indices = @transform_2, window_bounds = array<i64: 1, 1, 128>}]} {
    %c0_i32 = arith.constant 0 : i32
    %0 = arith.cmpi eq, %arg1, %c0_i32 : i32
    %1 = arith.extui %0 : i1 to i32
    %c0_i32_0 = arith.constant 0 : i32
    %2 = arith.cmpi ne, %1, %c0_i32_0 : i32
    scf.if %2 {
      %cst_10 = arith.constant 0.000000e+00 : f32
      %13 = vector.broadcast %cst_10 : f32 to vector<1x1x128xf32>
      %c0_11 = arith.constant 0 : index
      %c0_12 = arith.constant 0 : index
      %c0_13 = arith.constant 0 : index
      %14 = vector.load %arg4[%c0_11, %c0_12, %c0_13] : memref<1x1x128xf32, #tpu.memory_space<vmem>>, vector<1x1x128xf32>
      tpu.vector_store %arg4[%c0_11, %c0_12, %c0_13], %13 {strides = array<i32>} : memref<1x1x128xf32, #tpu.memory_space<vmem>>, vector<1x1x128xf32>,
    } else {
    }
    %c0 = arith.constant 0 : index
    %c0_1 = arith.constant 0 : index
    %3 = vector.load %arg2[%c0, %c0_1] : memref<32x128xf32, #tpu.memory_space<vmem>>, vector<32x128xf32>
    %c0_2 = arith.constant 0 : index
    %c0_3 = arith.constant 0 : index
    %4 = vector.load %arg3[%c0_2, %c0_3] : memref<32x128xf32, #tpu.memory_space<vmem>>, vector<32x128xf32>
    %5 = arith.subf %3, %4 : vector<32x128xf32>
    %6 = arith.mulf %5, %5 : vector<32x128xf32>
    %c0_4 = arith.constant 0 : index
    %c0_5 = arith.constant 0 : index
    %c0_6 = arith.constant 0 : index
    %7 = vector.load %arg4[%c0_4, %c0_5, %c0_6] : memref<1x1x128xf32, #tpu.memory_space<vmem>>, vector<1x1x128xf32>
    %cst = arith.constant dense<0.000000e+00> : vector<128xf32>
    %8 = vector.multi_reduction <add>, %6, %cst [0] : vector<32x128xf32> to vector<128xf32>
    %9 = vector.shape_cast %8 : vector<128xf32> to vector<1x128xf32>
    %10 = vector.shape_cast %9 : vector<1x128xf32> to vector<1x1x128xf32>
    %11 = arith.addf %7, %10 : vector<1x1x128xf32>
    %c0_7 = arith.constant 0 : index
    %c0_8 = arith.constant 0 : index
    %c0_9 = arith.constant 0 : index
    %12 = vector.load %arg4[%c0_7, %c0_8, %c0_9] : memref<1x1x128xf32, #tpu.memory_space<vmem>>, vector<1x1x128xf32>
    tpu.vector_store %arg4[%c0_7, %c0_8, %c0_9], %11 {strides = array<i32>} : memref<1x1x128xf32, #tpu.memory_space<vmem>>, vector<1x1x128xf32>,
    return
  }
  func.func @transform_0(%arg0: i32, %arg1: i32) -> (i32, i32) {
    %c1_i32 = arith.constant 1 : i32
    %0 = arith.muli %arg0, %c1_i32 : i32
    %1 = arith.addi %0, %arg1 : i32
    %c0_i32 = arith.constant 0 : i32
    %2 = arith.minsi %1, %c0_i32 : i32
    %c0_i32_0 = arith.constant 0 : i32
    %c0_i32_1 = arith.constant 0 : i32
    return %2, %c0_i32_0 : i32, i32
  }
  func.func @transform_1(%arg0: i32, %arg1: i32) -> (i32, i32) {
    %c1_i32 = arith.constant 1 : i32
    %0 = arith.muli %arg0, %c1_i32 : i32
    %1 = arith.addi %0, %arg1 : i32
    %c0_i32 = arith.constant 0 : i32
    %2 = arith.minsi %1, %c0_i32 : i32
    %c0_i32_0 = arith.constant 0 : i32
    %c0_i32_1 = arith.constant 0 : i32
    return %2, %c0_i32_0 : i32, i32
  }
  func.func @transform_2(%arg0: i32, %arg1: i32) -> (i32, i32, i32) {
    %c0_i32 = arith.constant 0 : i32
    %c0_i32_0 = arith.constant 0 : i32
    %c0_i32_1 = arith.constant 0 : i32
    return %arg0, %c0_i32, %c0_i32_0 : i32, i32, i32
  }
}

</mosaic_0001>

<bundles_post_ra>
// kernel: _mse_loss_impl.1
= control target key start
LH: loop header
LB: loop body
LE: loop exit
PB: predicated region body
PF: predicated region fallthrough
CT: control target
= control target key end

     0   :  { %v125_v0 = vmov 0.0   ;;  %s174_s2 = inlined_call_operand.vmem [shape: f32[1,1,128], index: 2, kind: output, shape index: {}]   ;;  %s175_s0 = inlined_call_operand.vmem [shape: f32[32,128], index: 0, kind: input, shape index: {}]   ;;  %s176_s1 = inlined_call_operand.vmem [shape: f32[32,128], index: 1, kind: input, shape index: {}]  }
   0x1   :  { %79 = vst [vmem:[%s174_s2] sm:$0x1] %v125_v0  ;;  %v80_v1 = vld [vmem:[%s175_s0] sm:$0xff]  ;;  %v81_v2 = vld [vmem:[%s175_s0 + $0x8] sm:$0xff]  ;;  %v82_v3 = vld [vmem:[%s175_s0 + $0x10] sm:$0xff] }
   0x2   :  { %v83_v4 = vld [vmem:[%s175_s0 + $0x18] sm:$0xff]  ;;  %v84_v5 = vld [vmem:[%s176_s1] sm:$0xff]  ;;  %v85_v6 = vld [vmem:[%s176_s1 + $0x8] sm:$0xff] }
   0x3   :  { %v86_v7 = vld [vmem:[%s176_s1 + $0x10] sm:$0xff]  ;;  %v87_v8 = vld [vmem:[%s176_s1 + $0x18] sm:$0xff]  ;;  %v88_v9 = vsub.f32 %v80_v1, %v84_v5  ;;  %v89_v10 = vsub.f32 %v81_v2, %v85_v6 }
   0x4   :  { %v90_v11 = vsub.f32 %v82_v3, %v86_v7  ;;  %v91_v12 = vsub.f32 %v83_v4, %v87_v8 }
   0x5   :  { %v92_v13 = vmul.f32 %v88_v9, %v88_v9  ;;  %v93_v14 = vmul.f32 %v89_v10, %v89_v10 }
   0x6   :  { %v94_v15 = vmul.f32 %v90_v11, %v90_v11  ;;  %v95_v16 = vmul.f32 %v91_v12, %v91_v12 }
   0x7   :  { %v97_v17 = vadd.f32 %v93_v14, %v92_v13 }
   0x8   :  { %v96_v25 = vld [vmem:[%s174_s2] sm:$0x1] }
   0x9   :  { %v98_v18 = vadd.f32 %v97_v17, %v94_v15 }
   0xb   :  { %v99_v19 = vadd.f32 %v98_v18, %v95_v16 }
   0xd   :  { %v100_v20 = vrot.slane %v99_v19, 4 }
   0xf   :  { %v101_v21 = vadd.f32 %v100_v20, %v99_v19 }
  0x11   :  { %v102_v22 = vrot.slane %v101_v21, 2 }
  0x13   :  { %v103_v23 = vadd.f32 %v102_v22, %v101_v21 }
  0x15   :  { %v104_v24 = vrot.slane %v103_v23, 1 }
  0x17   :  { %v105_v26 = vadd.f32 %v104_v24, %v103_v23 }
  0x19   :  { %v106_v27 = vadd.f32 %v105_v26, %v96_v25 }
  0x1b   :  { %107 = vst [vmem:[%s174_s2] sm:$0x1] %v106_v27 }

</bundles_post_ra>
